<compile_context>
chip_gen: v6e
topology: v6e:2x2x1
jax: 0.10.0
libtpu: 0.0.40
codegen_flags: <defaults>
</compile_context>

<pallas_src>
import functools

import jax
import jax.numpy as jnp
from jax.experimental import pallas as pl
from jax.experimental.pallas import tpu as pltpu

RMS_EPS = 1e-6


def _round_up(n, m):
    return ((n + m - 1) // m) * m


def _cdiv(a, b):
    return -(-a // b)


# --------------------------------------------------------------------------
# Kernel
# --------------------------------------------------------------------------
def titans_forward_kernel(x_ref, w1_ref, w2_ref, b2_ref,
                          wqm_ref, m2_ref, wd_ref, bd_ref, o_ref):
    x = x_ref[...]                                            # (TB, K_pad) bf16

    # ---------------- encoder: Linear -> ReLU -> Linear ----------------
    # enc_b1 is folded into w1 via the 1.0 column of x (padded K slot).
    h = jnp.dot(x, w1_ref[...], preferred_element_type=jnp.float32)
    h = jnp.maximum(h, 0.0).astype(jnp.bfloat16)
    enc = jnp.dot(h, w2_ref[...], preferred_element_type=jnp.float32) + b2_ref[...]

    # ------------- NeuralMemory retrieval (seq_len == 1) ---------------
    # TODO(synk): the store path of NeuralMemory (per-chunk surprise-gradient
    # update with momentum / weight decay) never executes for seq_len <
    # chunk_size and is therefore omitted; only retrieval is implemented.
    # pre-RMSNorm followed by one folded matmul wqm = diag(gamma) @ Wq @ M1.
    var = jnp.mean(enc * enc, axis=-1, keepdims=True)
    normed = (enc * jax.lax.rsqrt(var + RMS_EPS)).astype(jnp.bfloat16)
    m_h = jax.nn.gelu(
        jnp.dot(normed, wqm_ref[...], preferred_element_type=jnp.float32),
        approximate=True).astype(jnp.bfloat16)
    # TODO(synk): tanh-approx GELU used; PyTorch nn.GELU() defaults to erf.
    retrieved = jnp.dot(m_h, m2_ref[...], preferred_element_type=jnp.float32)

    # --------- decoder: ReLU -> Linear (lane-dense bf16 store) ----------
    d = jnp.maximum(retrieved, 0.0).astype(jnp.bfloat16)
    o_ref[...] = (jnp.dot(d, wd_ref[...], preferred_element_type=jnp.float32)
                  + bd_ref[...]).astype(o_ref.dtype)


# --------------------------------------------------------------------------
# One-time weight preprocessing (hoisted out of the per-call path)
# --------------------------------------------------------------------------
def prepare_params(params):
    """Fold/pad/cast weights once; returns (arrays_pytree, static_meta)."""
    input_len, dim = params["enc_w1"].shape
    output_len = params["dec_w"].shape[1]

    k_pad = _round_up(input_len + 1, 128)     # +1 reserves the bias column
    n_pad = _round_up(output_len, 128)        # lane-dense output store

    # algebraic fold: ((x_hat * gamma) @ Wq) @ M1 == x_hat @ wqm
    gamma_col = params["mem_gamma"].reshape(dim, 1)
    wqm = (gamma_col * params["mem_wq"]) @ params["mem_m1"]     # (dim, dim) f32

    w1 = jnp.zeros((k_pad, dim), jnp.float32)
    w1 = w1.at[:input_len, :].set(params["enc_w1"])
    w1 = w1.at[input_len, :].set(params["enc_b1"].reshape(-1))  # bias fold
    wd = jnp.zeros((dim, n_pad), jnp.float32).at[:, :output_len].set(params["dec_w"])
    bd = jnp.zeros((1, n_pad), jnp.float32).at[:, :output_len].set(params["dec_b"])

    arrays = {
        "w1": w1.astype(jnp.bfloat16),
        "w2": params["enc_w2"].astype(jnp.bfloat16),
        "b2": params["enc_b2"].astype(jnp.float32),
        "wqm": wqm.astype(jnp.bfloat16),
        "m2": params["mem_m2"].astype(jnp.bfloat16),
        "wd": wd.astype(jnp.bfloat16),
        "bd": bd.astype(jnp.float32),
    }
    meta = {"input_len": int(input_len), "output_len": int(output_len)}
    return arrays, meta


# --------------------------------------------------------------------------
# Tiling policy (per TPU generation)
# --------------------------------------------------------------------------
def _choose_tiling(B, device_kind, max_tile=2048):
    b16 = _round_up(max(B, 1), 16)            # bf16 min sublane tile is 16
    # v7x has 2 TensorCores per chip: keep >= 2 parallel grid steps so both
    # cores get work.  v5e/v6e have a single TC (grid is a serial loop), so
    # one big step amortizes the ~600-cycle per-step overhead.
    two_tc = "v7" in device_kind.lower()
    min_steps = 2 if (two_tc and b16 >= 32) else 1
    steps = max(min_steps, _cdiv(b16, max_tile))
    tile = _round_up(_cdiv(b16, steps), 16)
    b_pad = tile * steps
    return tile, b_pad


# --------------------------------------------------------------------------
# Forward pass
# --------------------------------------------------------------------------
@functools.partial(jax.jit, static_argnames=("tile", "b_pad", "output_len"))
def _forecast_jit(x, arrays, tile, b_pad, output_len):
    B, input_len = x.shape
    k_pad, dim = arrays["w1"].shape
    n_pad = arrays["wd"].shape[1]

    # Pad the input directly in bf16 and add the 1.0 bias column.
    xp = jnp.pad(x.astype(jnp.bfloat16),
                 ((0, b_pad - B), (0, k_pad - input_len)))
    xp = xp.at[:, input_len].set(jnp.bfloat16(1.0))

    def const_spec(arr):
        zeros = (0,) * arr.ndim
        return pl.BlockSpec(arr.shape, lambda i, zeros=zeros: zeros)

    out = pl.pallas_call(
        titans_forward_kernel,
        out_shape=jax.ShapeDtypeStruct((b_pad, n_pad), jnp.bfloat16),
        grid=(b_pad // tile,),
        in_specs=[
            pl.BlockSpec((tile, k_pad), lambda i: (i, 0)),   # x: tiled on batch
            const_spec(arrays["w1"]),
            const_spec(arrays["w2"]), const_spec(arrays["b2"]),
            const_spec(arrays["wqm"]), const_spec(arrays["m2"]),
            const_spec(arrays["wd"]), const_spec(arrays["bd"]),
        ],
        out_specs=pl.BlockSpec((tile, n_pad), lambda i: (i, 0)),
        compiler_params=pltpu.CompilerParams(
            dimension_semantics=("parallel",)),
    )(xp, arrays["w1"], arrays["w2"], arrays["b2"],
      arrays["wqm"], arrays["m2"], arrays["wd"], arrays["bd"])

    return out[:B, :output_len].astype(jnp.float32)


def titans_forecast(x, prepped, *, max_tile=2048):
    arrays, meta = prepped
    B = x.shape[0]
    device_kind = jax.devices()[0].device_kind
    tile, b_pad = _choose_tiling(B, device_kind, max_tile)
    return _forecast_jit(x, arrays, tile=tile, b_pad=b_pad,
                         output_len=meta["output_len"])


# --------------------------------------------------------------------------
# Pure-JAX reference + parameter init (for the correctness check)
# --------------------------------------------------------------------------
def titans_reference(x, p):
    h = jnp.maximum(x @ p["enc_w1"] + p["enc_b1"], 0.0)
    enc = h @ p["enc_w2"] + p["enc_b2"]
    var = jnp.mean(enc * enc, axis=-1, keepdims=True)
    normed = enc * jax.lax.rsqrt(var + RMS_EPS) * p["mem_gamma"]
    q = normed @ p["mem_wq"]
    retrieved = jax.nn.gelu(q @ p["mem_m1"], approximate=True) @ p["mem_m2"]
    return jnp.maximum(retrieved, 0.0) @ p["dec_w"] + p["dec_b"]


def init_params(key, input_len=168, output_len=24, dim=128):
    ks = jax.random.split(key, 12)

    def lin_w(k, fan_in, fan_out):
        s = 1.0 / jnp.sqrt(jnp.float32(fan_in))
        return jax.random.uniform(k, (fan_in, fan_out), jnp.float32, -s, s)

    def lin_b(k, fan_in, fan_out):
        s = 1.0 / jnp.sqrt(jnp.float32(fan_in))
        return jax.random.uniform(k, (1, fan_out), jnp.float32, -s, s)

    return {
        "enc_w1": lin_w(ks[0], input_len, dim),
        "enc_b1": lin_b(ks[1], input_len, dim),
        "enc_w2": lin_w(ks[2], dim, dim),
        "enc_b2": lin_b(ks[3], dim, dim),
        "mem_gamma": jnp.ones((1, dim), jnp.float32),          # RMSNorm weight
        "mem_wq": lin_w(ks[4], dim, dim),                      # to_queries (no bias)
        "mem_m1": lin_w(ks[5], dim, dim),                      # memory MLP layer 1
        "mem_m2": lin_w(ks[6], dim, dim),                      # memory MLP layer 2
        "dec_w": lin_w(ks[7], dim, output_len),
        "dec_b": lin_b(ks[8], dim, output_len),
    }


if __name__ == "__main__":
    key = jax.random.PRNGKey(0)
    k_x, k_p = jax.random.split(key)

    B, INPUT_LEN, OUTPUT_LEN, DIM = 64, 168, 24, 128
    x = jax.random.normal(k_x, (B, INPUT_LEN), jnp.float32)
    params = init_params(k_p, INPUT_LEN, OUTPUT_LEN, DIM)

    prepped = prepare_params(params)               # one-time weight prep
    out = jax.block_until_ready(titans_forecast(x, prepped))
    ref = jax.block_until_ready(titans_reference(x, params))

    assert out.shape == (B, OUTPUT_LEN)
    max_err = float(jnp.max(jnp.abs(out - ref)))
    # bf16 matmul operands / bf16 output store vs f32 reference.
    assert jnp.allclose(out, ref, atol=2e-2, rtol=2e-2), (
        f"mismatch vs reference, max abs err = {max_err}")

    print("KERNEL_OK")
</pallas_src>

<mosaic_0001>
module attributes {stable_mosaic.version = 11 : i64} {
  func.func @titans_forward_kernel(%arg0: i32, %arg1: memref<64x256xbf16, #tpu.memory_space<vmem>>, %arg2: memref<256x128xbf16, #tpu.memory_space<vmem>>, %arg3: memref<128x128xbf16, #tpu.memory_space<vmem>>, %arg4: memref<1x128xf32, #tpu.memory_space<vmem>>, %arg5: memref<128x128xbf16, #tpu.memory_space<vmem>>, %arg6: memref<128x128xbf16, #tpu.memory_space<vmem>>, %arg7: memref<128x128xbf16, #tpu.memory_space<vmem>>, %arg8: memref<1x128xf32, #tpu.memory_space<vmem>>, %arg9: memref<64x128xbf16, #tpu.memory_space<vmem>>) attributes {dimension_semantics = [#tpu.dimension_semantics<parallel>], iteration_bounds = array<i64: 1>, scalar_prefetch = 0 : i64, scratch_operands = 0 : i64, tpu.core_type = #tpu.core_type<tc>, window_params = [{transform_indices = @transform_0, window_bounds = array<i64: 64, 256>}, {pipeline_mode = #tpu.pipeline_mode<synchronous>, transform_indices = @transform_1, window_bounds = array<i64: 256, 128>}, {pipeline_mode = #tpu.pipeline_mode<synchronous>, transform_indices = @transform_2, window_bounds = array<i64: 128, 128>}, {pipeline_mode = #tpu.pipeline_mode<synchronous>, transform_indices = @transform_3, window_bounds = array<i64: 1, 128>}, {pipeline_mode = #tpu.pipeline_mode<synchronous>, transform_indices = @transform_4, window_bounds = array<i64: 128, 128>}, {pipeline_mode = #tpu.pipeline_mode<synchronous>, transform_indices = @transform_5, window_bounds = array<i64: 128, 128>}, {pipeline_mode = #tpu.pipeline_mode<synchronous>, transform_indices = @transform_6, window_bounds = array<i64: 128, 128>}, {pipeline_mode = #tpu.pipeline_mode<synchronous>, transform_indices = @transform_7, window_bounds = array<i64: 1, 128>}, {transform_indices = @transform_8, window_bounds = array<i64: 64, 128>}]} {
    %c0 = arith.constant 0 : index
    %c0_0 = arith.constant 0 : index
    %0 = vector.load %arg1[%c0, %c0_0] : memref<64x256xbf16, #tpu.memory_space<vmem>>, vector<64x256xbf16>
    %c0_1 = arith.constant 0 : index
    %c0_2 = arith.constant 0 : index
    %1 = vector.load %arg2[%c0_1, %c0_2] : memref<256x128xbf16, #tpu.memory_space<vmem>>, vector<256x128xbf16>
    %cst = arith.constant dense<0.000000e+00> : vector<64x128xf32>
    %2 = tpu.matmul %0, %1, %cst {dimension_numbers = #tpu.dot_dimension_numbers<[1], [0], [0], [1], [0, 0, 1, 1], [], []>} : vector<64x256xbf16>, vector<256x128xbf16>, vector<64x128xf32> -> vector<64x128xf32>
    %cst_3 = arith.constant 0.000000e+00 : f32
    %3 = vector.broadcast %cst_3 : f32 to vector<64x128xf32>
    %4 = arith.maximumf %2, %3 : vector<64x128xf32>
    %5 = arith.truncf %4 : vector<64x128xf32> to vector<64x128xbf16>
    %c0_4 = arith.constant 0 : index
    %c0_5 = arith.constant 0 : index
    %6 = vector.load %arg3[%c0_4, %c0_5] : memref<128x128xbf16, #tpu.memory_space<vmem>>, vector<128x128xbf16>
    %cst_6 = arith.constant dense<0.000000e+00> : vector<64x128xf32>
    %7 = tpu.matmul %5, %6, %cst_6 {dimension_numbers = #tpu.dot_dimension_numbers<[1], [0], [0], [1], [0, 0, 1, 1], [], []>} : vector<64x128xbf16>, vector<128x128xbf16>, vector<64x128xf32> -> vector<64x128xf32>
    %c0_7 = arith.constant 0 : index
    %c0_8 = arith.constant 0 : index
    %8 = vector.load %arg4[%c0_7, %c0_8] : memref<1x128xf32, #tpu.memory_space<vmem>>, vector<1x128xf32>
    %9 = vector.broadcast %8 : vector<1x128xf32> to vector<64x128xf32>
    %10 = arith.addf %7, %9 : vector<64x128xf32>
    %11 = arith.mulf %10, %10 : vector<64x128xf32>
    %cst_9 = arith.constant dense<0.000000e+00> : vector<64xf32>
    %12 = vector.multi_reduction <add>, %11, %cst_9 [1] : vector<64x128xf32> to vector<64xf32>
    %13 = vector.shape_cast %12 : vector<64xf32> to vector<64x1xf32>
    %cst_10 = arith.constant 1.280000e+02 : f32
    %14 = vector.broadcast %cst_10 : f32 to vector<64x1xf32>
    %15 = arith.divf %13, %14 : vector<64x1xf32>
    %cst_11 = arith.constant 9.99999997E-7 : f32
    %16 = vector.broadcast %cst_11 : f32 to vector<64x1xf32>
    %17 = arith.addf %15, %16 : vector<64x1xf32>
    %18 = math.rsqrt %17 : vector<64x1xf32>
    %19 = vector.broadcast %18 : vector<64x1xf32> to vector<64x128xf32>
    %20 = arith.mulf %10, %19 : vector<64x128xf32>
    %21 = arith.truncf %20 : vector<64x128xf32> to vector<64x128xbf16>
    %c0_12 = arith.constant 0 : index
    %c0_13 = arith.constant 0 : index
    %22 = vector.load %arg5[%c0_12, %c0_13] : memref<128x128xbf16, #tpu.memory_space<vmem>>, vector<128x128xbf16>
    %cst_14 = arith.constant dense<0.000000e+00> : vector<64x128xf32>
    %23 = tpu.matmul %21, %22, %cst_14 {dimension_numbers = #tpu.dot_dimension_numbers<[1], [0], [0], [1], [0, 0, 1, 1], [], []>} : vector<64x128xbf16>, vector<128x128xbf16>, vector<64x128xf32> -> vector<64x128xf32>
    %24 = arith.mulf %23, %23 : vector<64x128xf32>
    %25 = arith.mulf %23, %24 : vector<64x128xf32>
    %cst_15 = arith.constant 4.471500e-02 : f32
    %26 = vector.broadcast %cst_15 : f32 to vector<64x128xf32>
    %27 = arith.mulf %26, %25 : vector<64x128xf32>
    %28 = arith.addf %23, %27 : vector<64x128xf32>
    %cst_16 = arith.constant 0.797884583 : f32
    %29 = vector.broadcast %cst_16 : f32 to vector<64x128xf32>
    %30 = arith.mulf %29, %28 : vector<64x128xf32>
    %31 = math.tanh %30 : vector<64x128xf32>
    %cst_17 = arith.constant 1.000000e+00 : f32
    %32 = vector.broadcast %cst_17 : f32 to vector<64x128xf32>
    %33 = arith.addf %32, %31 : vector<64x128xf32>
    %cst_18 = arith.constant 5.000000e-01 : f32
    %34 = vector.broadcast %cst_18 : f32 to vector<64x128xf32>
    %35 = arith.mulf %34, %33 : vector<64x128xf32>
    %36 = arith.mulf %23, %35 : vector<64x128xf32>
    %37 = arith.truncf %36 : vector<64x128xf32> to vector<64x128xbf16>
    %c0_19 = arith.constant 0 : index
    %c0_20 = arith.constant 0 : index
    %38 = vector.load %arg6[%c0_19, %c0_20] : memref<128x128xbf16, #tpu.memory_space<vmem>>, vector<128x128xbf16>
    %cst_21 = arith.constant dense<0.000000e+00> : vector<64x128xf32>
    %39 = tpu.matmul %37, %38, %cst_21 {dimension_numbers = #tpu.dot_dimension_numbers<[1], [0], [0], [1], [0, 0, 1, 1], [], []>} : vector<64x128xbf16>, vector<128x128xbf16>, vector<64x128xf32> -> vector<64x128xf32>
    %cst_22 = arith.constant 0.000000e+00 : f32
    %40 = vector.broadcast %cst_22 : f32 to vector<64x128xf32>
    %41 = arith.maximumf %39, %40 : vector<64x128xf32>
    %42 = arith.truncf %41 : vector<64x128xf32> to vector<64x128xbf16>
    %c0_23 = arith.constant 0 : index
    %c0_24 = arith.constant 0 : index
    %43 = vector.load %arg7[%c0_23, %c0_24] : memref<128x128xbf16, #tpu.memory_space<vmem>>, vector<128x128xbf16>
    %cst_25 = arith.constant dense<0.000000e+00> : vector<64x128xf32>
    %44 = tpu.matmul %42, %43, %cst_25 {dimension_numbers = #tpu.dot_dimension_numbers<[1], [0], [0], [1], [0, 0, 1, 1], [], []>} : vector<64x128xbf16>, vector<128x128xbf16>, vector<64x128xf32> -> vector<64x128xf32>
    %c0_26 = arith.constant 0 : index
    %c0_27 = arith.constant 0 : index
    %45 = vector.load %arg8[%c0_26, %c0_27] : memref<1x128xf32, #tpu.memory_space<vmem>>, vector<1x128xf32>
    %46 = vector.broadcast %45 : vector<1x128xf32> to vector<64x128xf32>
    %47 = arith.addf %44, %46 : vector<64x128xf32>
    %48 = arith.truncf %47 : vector<64x128xf32> to vector<64x128xbf16>
    %c0_28 = arith.constant 0 : index
    %c0_29 = arith.constant 0 : index
    %49 = vector.load %arg9[%c0_28, %c0_29] : memref<64x128xbf16, #tpu.memory_space<vmem>>, vector<64x128xbf16>
    tpu.vector_store %arg9[%c0_28, %c0_29], %48 {strides = array<i32>} : memref<64x128xbf16, #tpu.memory_space<vmem>>, vector<64x128xbf16>,
    return
  }
  func.func @transform_0(%arg0: i32) -> (i32, i32) {
    %c0_i32 = arith.constant 0 : i32
    %c0_i32_0 = arith.constant 0 : i32
    return %arg0, %c0_i32 : i32, i32
  }
  func.func @transform_1(%arg0: i32) -> (i32, i32) {
    %c0_i32 = arith.constant 0 : i32
    %c0_i32_0 = arith.constant 0 : i32
    %c0_i32_1 = arith.constant 0 : i32
    return %c0_i32, %c0_i32_0 : i32, i32
  }
  func.func @transform_2(%arg0: i32) -> (i32, i32) {
    %c0_i32 = arith.constant 0 : i32
    %c0_i32_0 = arith.constant 0 : i32
    %c0_i32_1 = arith.constant 0 : i32
    return %c0_i32, %c0_i32_0 : i32, i32
  }
  func.func @transform_3(%arg0: i32) -> (i32, i32) {
    %c0_i32 = arith.constant 0 : i32
    %c0_i32_0 = arith.constant 0 : i32
    %c0_i32_1 = arith.constant 0 : i32
    return %c0_i32, %c0_i32_0 : i32, i32
  }
  func.func @transform_4(%arg0: i32) -> (i32, i32) {
    %c0_i32 = arith.constant 0 : i32
    %c0_i32_0 = arith.constant 0 : i32
    %c0_i32_1 = arith.constant 0 : i32
    return %c0_i32, %c0_i32_0 : i32, i32
  }
  func.func @transform_5(%arg0: i32) -> (i32, i32) {
    %c0_i32 = arith.constant 0 : i32
    %c0_i32_0 = arith.constant 0 : i32
    %c0_i32_1 = arith.constant 0 : i32
    return %c0_i32, %c0_i32_0 : i32, i32
  }
  func.func @transform_6(%arg0: i32) -> (i32, i32) {
    %c0_i32 = arith.constant 0 : i32
    %c0_i32_0 = arith.constant 0 : i32
    %c0_i32_1 = arith.constant 0 : i32
    return %c0_i32, %c0_i32_0 : i32, i32
  }
  func.func @transform_7(%arg0: i32) -> (i32, i32) {
    %c0_i32 = arith.constant 0 : i32
    %c0_i32_0 = arith.constant 0 : i32
    %c0_i32_1 = arith.constant 0 : i32
    return %c0_i32, %c0_i32_0 : i32, i32
  }
  func.func @transform_8(%arg0: i32) -> (i32, i32) {
    %c0_i32 = arith.constant 0 : i32
    %c0_i32_0 = arith.constant 0 : i32
    return %arg0, %c0_i32 : i32, i32
  }
}

</mosaic_0001>

<bundles_post_ra>
// kernel: _forecast_jit.1
= control target key start
LH: loop header
LB: loop body
LE: loop exit
PB: predicated region body
PF: predicated region fallthrough
CT: control target
= control target key end

     0   :  { %s1724_s1 = inlined_call_operand.vmem [shape: bf16[256,128], index: 1, kind: input, shape index: {}]   ;;  %s1725_s0 = inlined_call_operand.vmem [shape: bf16[64,256], index: 0, kind: input, shape index: {}]   ;;  %s1726_s2 = inlined_call_operand.vmem [shape: bf16[128,128], index: 2, kind: input, shape index: {}]   ;;  %s1727_s4 = inlined_call_operand.vmem [shape: bf16[128,128], index: 4, kind: input, shape index: {}]   ;;  %s1728_s3 = inlined_call_operand.vmem [shape: f32[1,128], index: 3, kind: input, shape index: {}]   ;;  %s1729_s5 = inlined_call_operand.vmem [shape: bf16[128,128], index: 5, kind: input, shape index: {}]   ;;  %s1730_s6 = inlined_call_operand.vmem [shape: bf16[128,128], index: 6, kind: input, shape index: {}]   ;;  %s1731_s7 = inlined_call_operand.vmem [shape: f32[1,128], index: 7, kind: input, shape index: {}]   ;;  %s1732_s8 = inlined_call_operand.vmem [shape: bf16[64,128], index: 8, kind: output, shape index: {}]  }
   0x1   :  { %v1303_v0 = vld [vmem:[%s1724_s1 + $0x78] sm:$0xff]   ;;  %v1305_v2 = vld [vmem:[%s1724_s1 + $0x70] sm:$0xff]   ;;  %v1307_v4 = vld [vmem:[%s1724_s1 + $0x68] sm:$0xff]  }
   0x2   :  { %v1304_v1 = vld [vmem:[%s1724_s1 + $0x38] sm:$0xff]   ;;  %1103 = vmatprep.subr.bf16.mxu0 %v1303_v0  ;;  %v1306_v3 = vld [vmem:[%s1724_s1 + $0x30] sm:$0xff]   ;;  %v1308_v5 = vld [vmem:[%s1724_s1 + $0x28] sm:$0xff]  }
   0x3   :  { %1104 = vmatpush3.bf16.msra.mxu0 %v1304_v1  ;;  %v1309_v6 = vld [vmem:[%s1724_s1 + $0x60] sm:$0xff]   ;;  %v1311_v8 = vld [vmem:[%s1724_s1 + $0x58] sm:$0xff]   ;;  %v1313_v10 = vld [vmem:[%s1724_s1 + $0x50] sm:$0xff]  }
   0x4   :  { %1105 = vmatprep.subr.bf16.mxu0 %v1305_v2  ;;  %v1310_v7 = vld [vmem:[%s1724_s1 + $0x20] sm:$0xff]   ;;  %v1312_v9 = vld [vmem:[%s1724_s1 + $0x18] sm:$0xff]   ;;  %v1314_v12 = vld [vmem:[%s1724_s1 + $0x10] sm:$0xff]  }
   0x5   :  { %v1321_v11 = vld [vmem:[%s1725_s0 + $0x4] ss:$8 sps:$4 sm:$0xff]   ;;  %v1331_v16 = vld [vmem:[%s1726_s2 + $0x38] sm:$0xff]   ;;  %v1332_v17 = vld [vmem:[%s1726_s2 + $0x30] sm:$0xff]  }
   0x6   :  { %238 = vmatprep.mubr.bf16.mxu0 %v1321_v11  ;;  %v1315_v13 = vld [vmem:[%s1724_s1 + $0x48] sm:$0xff]   ;;  %v1317_v15 = vld [vmem:[%s1724_s1 + $0x40] sm:$0xff]   ;;  %1191 = vmatprep.subr.bf16.mxu1 %v1331_v16  ;;  %v1322_v21 = vld [vmem:[%s1725_s0 + $0x14] ss:$8 sps:$4 sm:$0xff]  }
   0x7   :  { %1106 = vmatpush3.bf16.msra.mxu0 %v1306_v3  ;;  %v1316_v14 = vld [vmem:[%s1724_s1 + $0x8] sm:$0xff]   ;;  %1192 = vmatpush3.bf16.msra.mxu1 %v1331_v16  ;;  %v1318_v19 = vld [vmem:[%s1724_s1] sm:$0xff]   ;;  %v1324_v22 = vld [vmem:[%s1725_s0 + $0x10] ss:$8 sps:$4 sm:$0xff]  }
   0x8   :  { %1107 = vmatprep.subr.bf16.mxu0 %v1307_v4  ;;  %v1333_v18 = vld [vmem:[%s1726_s2 + $0x28] sm:$0xff]   ;;  %1193 = vmatprep.subr.bf16.mxu1 %v1332_v17  ;;  %v1328_v25 = vld [vmem:[%s1725_s0 + $0x34] ss:$8 sps:$4 sm:$0xff]   ;;  %v1330_v26 = vld [vmem:[%s1725_s0 + $0x30] ss:$8 sps:$4 sm:$0xff]  }
   0x9   :  { %v1319_v20 = vld [vmem:[%s1725_s0] ss:$8 sps:$4 sm:$0xff]   ;;  %v1325_v23 = vld [vmem:[%s1725_s0 + $0x24] ss:$8 sps:$4 sm:$0xff]   ;;  %v1335_v28 = vld [vmem:[%s1726_s2 + $0x18] sm:$0xff]  }
   0xa   :  { %v1327_v24 = vld [vmem:[%s1725_s0 + $0x20] ss:$8 sps:$4 sm:$0xff]   ;;  %v1336_v29 = vld [vmem:[%s1726_s2 + $0x10] sm:$0xff]   ;;  %v1339_v4 = vld [vmem:[%s1727_s4 + $0x38] sm:$0xff]  }
   0xb   :  { %1108 = vmatpush3.bf16.msra.mxu0 %v1308_v5  ;;  %1194 = vmatpush3.bf16.msra.mxu1 %v1332_v17  ;;  %v1334_v27 = vld [vmem:[%s1726_s2 + $0x20] sm:$0xff]   ;;  %v1337_v30 = vld [vmem:[%s1726_s2 + $0x8] sm:$0xff]  }
   0xc   :  { %1109 = vmatprep.subr.bf16.mxu0 %v1309_v6  ;;  %1195 = vmatprep.subr.bf16.mxu1 %v1333_v18  ;;  %v1338_v31 = vld [vmem:[%s1726_s2] sm:$0xff]  }
   0xd   :  { %v1030_v5 = vld [vmem:[%s1728_s3] ss:$0 sm:$0xff] }
   0xf   :  { %1110 = vmatpush3.bf16.msra.mxu0 %v1310_v7  ;;  %1196 = vmatpush3.bf16.msra.mxu1 %v1333_v18  ;;  %v1340_v18 = vld [vmem:[%s1727_s4 + $0x30] sm:$0xff]  }
  0x10   :  { %1111 = vmatprep.subr.bf16.mxu0 %v1311_v8  ;;  %1197 = vmatprep.subr.bf16.mxu1 %v1334_v27 }
  0x13   :  { %1112 = vmatpush3.bf16.msra.mxu0 %v1312_v9  ;;  %1198 = vmatpush3.bf16.msra.mxu1 %v1334_v27  ;;  %v1342_v27 = vld [vmem:[%s1727_s4 + $0x20] sm:$0xff]  }
  0x14   :  { %1113 = vmatprep.subr.bf16.mxu0 %v1313_v10  ;;  %1199 = vmatprep.subr.bf16.mxu1 %v1335_v28 }
  0x17   :  { %1114 = vmatpush3.bf16.msra.mxu0 %v1314_v12  ;;  %1200 = vmatpush3.bf16.msra.mxu1 %v1335_v28 }
  0x18   :  { %1115 = vmatprep.subr.bf16.mxu0 %v1315_v13  ;;  %1201 = vmatprep.subr.bf16.mxu1 %v1336_v29 }
  0x1b   :  { %1116 = vmatpush3.bf16.msra.mxu0 %v1316_v14  ;;  %1202 = vmatpush3.bf16.msra.mxu1 %v1336_v29 }
  0x1c   :  { %1117 = vmatprep.subr.bf16.mxu0 %v1317_v15  ;;  %1203 = vmatprep.subr.bf16.mxu1 %v1337_v30 }
  0x1f   :  { %1118 = vmatpush3.bf16.msra.mxu0 %v1318_v19  ;;  %1204 = vmatpush3.bf16.msra.mxu1 %v1337_v30 }
  0x20   :  { %1205 = vmatprep.subr.bf16.mxu1 %v1338_v31  ;;  %1215 = vmatprep.subr.bf16.mxu0 %v1339_v4 }
  0x22   :  { %239 = vmatmul.mubr.bf16.vlgmr.msra.gmra.mxu0 %v1319_v20 }
  0x23   :  { %246 = vmatprep.mubr.bf16.mxu0 %v1322_v21  ;;  %1206 = vmatpush3.bf16.msra.mxu1 %v1338_v31  ;;  %v1341_v21 = vld [vmem:[%s1727_s4 + $0x28] sm:$0xff]  }
  0x24   :  { %1216 = vmatpush3.bf16.msra.mxu0 %v1339_v4 }
  0x25   :  { %1217 = vmatprep.subr.bf16.mxu0 %v1340_v18 }
  0x28   :  { %1218 = vmatpush3.bf16.msra.mxu0 %v1340_v18  ;;  %v1348_v18 = vld [vmem:[%s1729_s5 + $0x30] sm:$0xff]  }
  0x29   :  { %1219 = vmatprep.subr.bf16.mxu0 %v1341_v21 }
  0x2a   :  { %247 = vmatmul.mubr.bf16.gmra.mxu0 %v1324_v22 }
  0x2b   :  { %254 = vmatprep.mubr.bf16.mxu0 %v1325_v23 }
  0x2c   :  { %1220 = vmatpush3.bf16.msra.mxu0 %v1341_v21  ;;  %v1351_v21 = vld [vmem:[%s1729_s5 + $0x18] sm:$0xff]  }
  0x2d   :  { %1221 = vmatprep.subr.bf16.mxu0 %v1342_v27 }
  0x30   :  { %1222 = vmatpush3.bf16.msra.mxu0 %v1342_v27  ;;  %v1644_v27 = vld [vmem:[%s1730_s6 + $0x28] sm:$0xff]  }
  0x32   :  { %255 = vmatmul.mubr.bf16.gmra.mxu0 %v1327_v24 }
  0x33   :  { %262 = vmatprep.mubr.bf16.mxu0 %v1328_v25 }
  0x3a   :  { %263 = vmatmul.mubr.bf16.gmra.mxu0 %v1330_v26 }
  0xe2   :  { %v1119_v32 = vpop.f32.mrf.mxu0 }
  0xe4   :  { %v1120_v33 = vpop.f32.mrf.mxu0 }
  0xe5   :  { %v1121_v35 = vadd.f32 %v1120_v33, %v1119_v32  ;;  %v1343_v32 = vld [vmem:[%s1727_s4 + $0x18] sm:$0xff]   ;;  %v1344_v33 = vld [vmem:[%s1727_s4 + $0x10] sm:$0xff]  }
  0xe6   :  { %v1122_v34 = vpop.f32.mrf.mxu0  ;;  %1223 = vmatprep.subr.bf16.mxu0 %v1343_v32 }
  0xe7   :  { %v271_v39 = vmax.f32 %v1121_v35, 0.0  ;;  %1224 = vmatpush3.bf16.msra.mxu0 %v1343_v32  ;;  %v1345_v35 = vld [vmem:[%s1727_s4 + $0x8] sm:$0xff]  }
  0xe8   :  { %v1123_v36 = vpop.f32.mrf.mxu0  ;;  %1225 = vmatprep.subr.bf16.mxu0 %v1344_v33 }
  0xe9   :  { %v1124_v37 = vadd.f32 %v1123_v36, %v1122_v34  ;;  %v1346_v36 = vld [vmem:[%s1727_s4] sm:$0xff]  }
  0xea   :  { %v1125_v38 = vpop.f32.mrf.mxu0 }
  0xeb   :  { %v272_v40 = vmax.f32 %v1124_v37, 0.0  ;;  %1226 = vmatpush3.bf16.msra.mxu0 %v1344_v33 }
  0xec   :  { %v1126_v41 = vpop.f32.mrf.mxu0  ;;  %1227 = vmatprep.subr.bf16.mxu0 %v1345_v35 }
  0xed   :  { %v279_v42 = vpack.c.bf16 %v272_v40, %v271_v39  ;;  %v1127_v44 = vadd.f32 %v1126_v41, %v1125_v38 }
  0xee   :  { %v1128_v43 = vpop.f32.mrf.mxu0 }
  0xef   :  { %1207 = vmatprep.mubr.bf16.mxu1 %v279_v42  ;;  %v273_v48 = vmax.f32 %v1127_v44, 0.0  ;;  %1228 = vmatpush3.bf16.msra.mxu0 %v1345_v35 }
  0xf0   :  { %v1129_v45 = vpop.f32.mrf.mxu0  ;;  %1229 = vmatprep.subr.bf16.mxu0 %v1346_v36 }
  0xf1   :  { %v1130_v46 = vadd.f32 %v1129_v45, %v1128_v43 }
  0xf2   :  { %v1131_v47 = vpop.f32.mrf.mxu0 }
  0xf3   :  { %v274_v49 = vmax.f32 %v1130_v46, 0.0  ;;  %1230 = vmatpush3.bf16.msra.mxu0 %v1346_v36 }
  0xf4   :  { %v1132_v50 = vpop.f32.mrf.mxu0 }
  0xf5   :  { %v280_v51 = vpack.c.bf16 %v274_v49, %v273_v48  ;;  %v1133_v53 = vadd.f32 %v1132_v50, %v1131_v47 }
  0xf6   :  { %v1134_v52 = vpop.f32.mrf.mxu0 }
  0xf7   :  { %1208 = vmatmul.mubr.bf16.vlgmr.msra.gmra.mxu1 %v280_v51  ;;  %v275_v57 = vmax.f32 %v1133_v53, 0.0 }
  0xf8   :  { %v1135_v54 = vpop.f32.mrf.mxu0 }
  0xf9   :  { %v1136_v55 = vadd.f32 %v1135_v54, %v1134_v52 }
  0xfa   :  { %v1137_v56 = vpop.f32.mrf.mxu0 }
  0xfb   :  { %v276_v58 = vmax.f32 %v1136_v55, 0.0 }
  0xfc   :  { %v1138_v59 = vpop.f32.mrf.mxu0 }
  0xfd   :  { %v281_v60 = vpack.c.bf16 %v276_v58, %v275_v57  ;;  %v1139_v62 = vadd.f32 %v1138_v59, %v1137_v56 }
  0xfe   :  { %v1140_v61 = vpop.f32.mrf.mxu0 }
  0xff   :  { %1211 = vmatprep.mubr.bf16.mxu1 %v281_v60  ;;  %v277_v1 = vmax.f32 %v1139_v62, 0.0 }
 0x100   :  { %v1141_v63 = vpop.f32.mrf.mxu0 }
 0x101   :  { %v1142_v0 = vadd.f32 %v1141_v63, %v1140_v61 }
 0x103   :  { %v278_v2 = vmax.f32 %v1142_v0, 0.0 }
 0x105   :  { %v282_v3 = vpack.c.bf16 %v278_v2, %v277_v1 }
 0x107   :  { %1212 = vmatmul.mubr.bf16.gmra.mxu1 %v282_v3 }
 0x1b7   :  { %v1209_v6 = vpop.f32.mrf.mxu1 }
 0x1b8   :  { %v1542_v7 = vadd.f32 %v1209_v6, %v1030_v5 }
 0x1b9   :  { %v388_v8 = vpop.f32.mrf.mxu1 }
 0x1ba   :  { %v1544_v9 = vadd.f32 %v1030_v5, %v388_v8  ;;  %v421_v10 = vmul.f32 %v1542_v7, %v1542_v7 }
 0x1bb   :  { %v1210_v11 = vpop.f32.mrf.mxu1 }
 0x1bc   :  { %v1548_v12 = vadd.f32 %v1210_v11, %v1030_v5  ;;  %431 = vadd.xlane.f32.xlu1 %v421_v10  ;;  %v419_v13 = vmul.f32 %v1544_v9, %v1544_v9 }
 0x1bd   :  { %v391_v14 = vpop.f32.mrf.mxu1 }
 0x1be   :  { %v1552_v15 = vadd.f32 %v1030_v5, %v391_v14  ;;  %427 = vadd.xlane.f32.xlu0 %v419_v13  ;;  %v422_v16 = vmul.f32 %v1548_v12, %v1548_v12 }
 0x1c0   :  { %433 = vadd.xlane.f32.xlu1 %v422_v16  ;;  %v420_v17 = vmul.f32 %v1552_v15, %v1552_v15 }
 0x1c2   :  { %429 = vadd.xlane.f32.xlu0 %v420_v17  ;;  %v1347_v17 = vld [vmem:[%s1729_s5 + $0x38] sm:$0xff]  }
 0x1c3   :  { %1239 = vmatprep.subr.bf16.mxu1 %v1347_v17 }
 0x1c4   :  { %1240 = vmatpush3.bf16.msra.mxu1 %v1347_v17 }
 0x1c5   :  { %1241 = vmatprep.subr.bf16.mxu1 %v1348_v18 }
 0x1c7   :  { %v1213_v19 = vpop.f32.mrf.mxu1 }
 0x1c8   :  { %v1566_v24 = vadd.f32 %v1213_v19, %v1030_v5  ;;  %1242 = vmatpush3.bf16.msra.mxu1 %v1348_v18  ;;  %v1349_v19 = vld [vmem:[%s1729_s5 + $0x28] sm:$0xff]  }
 0x1c9   :  { %v404_v20 = vpop.f32.mrf.mxu1  ;;  %1243 = vmatprep.subr.bf16.mxu1 %v1349_v19 }
 0x1ca   :  { %v1564_v22 = vadd.f32 %v1030_v5, %v404_v20  ;;  %v425_v31 = vmul.f32 %v1566_v24, %v1566_v24  ;;  %v1350_v20 = vld [vmem:[%s1729_s5 + $0x20] sm:$0xff]  }
 0x1cb   :  { %v1214_v23 = vpop.f32.mrf.mxu1 }
 0x1cc   :  { %v423_v25 = vmul.f32 %v1564_v22, %v1564_v22  ;;  %v1575_v29 = vadd.f32 %v1214_v23, %v1030_v5  ;;  %1244 = vmatpush3.bf16.msra.mxu1 %v1349_v19  ;;  %v1353_v23 = vld [vmem:[%s1729_s5 + $0x8] sm:$0xff]  }
 0x1cd   :  { %v407_v26 = vpop.f32.mrf.mxu1  ;;  %1245 = vmatprep.subr.bf16.mxu1 %v1350_v20 }
 0x1ce   :  { %v1573_v28 = vadd.f32 %v1030_v5, %v407_v26  ;;  %435 = vadd.xlane.f32.xlu0 %v423_v25  ;;  %v426_v34 = vmul.f32 %v1575_v29, %v1575_v29  ;;  %v1630_v25 = vld [vmem:[%s1730_s6 + $0x38] sm:$0xff]   ;;  %v1635_v26 = vld [vmem:[%s1730_s6 + $0x30] sm:$0xff]  }
 0x1cf   :  { %1263 = vmatprep.subr.bf16.mxu0 %v1630_v25 }
 0x1d0   :  { %v424_v30 = vmul.f32 %v1573_v28, %v1573_v28  ;;  %1246 = vmatpush3.bf16.msra.mxu1 %v1350_v20 }
 0x1d1   :  { %1247 = vmatprep.subr.bf16.mxu1 %v1351_v21 }
 0x1d2   :  { %437 = vadd.xlane.f32.xlu1 %v424_v30  ;;  %439 = vadd.xlane.f32.xlu0 %v425_v31 }
 0x1d4   :  { %1248 = vmatpush3.bf16.msra.mxu1 %v1351_v21 }
 0x1d6   :  { %441 = vadd.xlane.f32.xlu1 %v426_v34 }
 0x245   :  { %v432_v37 = vpop.xlane.xlu1 %431 }
 0x246   :  { %v446_v38 = vmul.f32 0.0078125, %v432_v37 }
 0x247   :  { %v428_v39 = vpop.xlane.xlu0 %427 }
 0x248   :  { %v444_v40 = vmul.f32 0.0078125, %v428_v39  ;;  %v454_v44 = vadd.f32 1e-06, %v446_v38 }
 0x249   :  { %v434_v41 = vpop.xlane.xlu1 %433 }
 0x24a   :  { %v452_v42 = vadd.f32 1e-06, %v444_v40  ;;  %v447_v43 = vmul.f32 0.0078125, %v434_v41 }
 0x24b   :  { %v430_v45 = vpop.xlane.xlu0 %429 }
 0x24c   :  { %v455_v46 = vadd.f32 1e-06, %v447_v43  ;;  %v445_v47 = vmul.f32 0.0078125, %v430_v45  ;;  %1363 = vrsqrt.f32 %v452_v42 }
 0x24e   :  { %1365 = vrsqrt.f32 %v455_v46  ;;  %v453_v48 = vadd.f32 1e-06, %v445_v47 }
 0x24f   :  { %1367 = vrsqrt.f32 %v454_v44 }
 0x250   :  { %1369 = vrsqrt.f32 %v453_v48 }
 0x257   :  { %v436_v49 = vpop.xlane.xlu0 %435 }
 0x258   :  { %v448_v50 = vmul.f32 0.0078125, %v436_v49 }
 0x259   :  { %v1364_v51 = vpop.eup %1363 }
 0x25a   :  { %v456_v52 = vadd.f32 1e-06, %v448_v50  ;;  %v468_v60 = vmul.f32 %v1364_v51, %v1544_v9 }
 0x25b   :  { %v1366_v53 = vpop.eup %1365  ;;  %v438_v54 = vpop.xlane.xlu1 %437 }
 0x25c   :  { %v440_v55 = vpop.xlane.xlu0 %439  ;;  %v1368_v56 = vpop.eup %1367  ;;  %v449_v57 = vmul.f32 0.0078125, %v438_v54  ;;  %v471_v61 = vmul.f32 %v1366_v53, %v1548_v12  ;;  %1371 = vrsqrt.f32 %v456_v52 }
 0x25d   :  { %v450_v58 = vmul.f32 0.0078125, %v440_v55  ;;  %v1370_v59 = vpop.eup %1369  ;;  %v470_v2 = vmul.f32 %v1368_v56, %v1542_v7 }
 0x25e   :  { %v457_v62 = vadd.f32 1e-06, %v449_v57  ;;  %v469_v0 = vmul.f32 %v1370_v59, %v1552_v15 }
 0x25f   :  { %v458_v63 = vadd.f32 1e-06, %v450_v58  ;;  %v442_v1 = vpop.xlane.xlu1 %441  ;;  %v477_v5 = vpack.c.bf16 %v471_v61, %v470_v2 }
 0x260   :  { %1373 = vrsqrt.f32 %v457_v62  ;;  %v451_v3 = vmul.f32 0.0078125, %v442_v1  ;;  %v476_v4 = vpack.c.bf16 %v469_v0, %v468_v60 }
 0x261   :  { %1375 = vrsqrt.f32 %v458_v63 }
 0x262   :  { %v459_v6 = vadd.f32 1e-06, %v451_v3  ;;  %1231 = vmatprep.mubr.bf16.mxu0 %v476_v4 }
 0x263   :  { %1232 = vmatmul.mubr.bf16.vlgmr.msra.gmra.mxu0 %v477_v5 }
 0x264   :  { %1377 = vrsqrt.f32 %v459_v6  ;;  %1264 = vmatpush3.bf16.msra.mxu0 %v1630_v25 }
 0x265   :  { %1265 = vmatprep.subr.bf16.mxu0 %v1635_v26 }
 0x268   :  { %1266 = vmatpush3.bf16.msra.mxu0 %v1635_v26 }
 0x269   :  { %v1372_v8 = vpop.eup %1371  ;;  %1267 = vmatprep.subr.bf16.mxu0 %v1644_v27 }
 0x26a   :  { %v472_v10 = vmul.f32 %v1372_v8, %v1564_v22  ;;  %v1352_v22 = vld [vmem:[%s1729_s5 + $0x10] sm:$0xff]  }
 0x26b   :  { %1249 = vmatprep.subr.bf16.mxu1 %v1352_v22 }
 0x26c   :  { %1250 = vmatpush3.bf16.msra.mxu1 %v1352_v22  ;;  %1268 = vmatpush3.bf16.msra.mxu0 %v1644_v27 }
 0x26d   :  { %v1374_v9 = vpop.eup %1373  ;;  %1251 = vmatprep.subr.bf16.mxu1 %v1353_v23 }
 0x26e   :  { %v473_v11 = vmul.f32 %v1374_v9, %v1573_v28  ;;  %v1376_v12 = vpop.eup %1375  ;;  %v1651_v28 = vld [vmem:[%s1730_s6 + $0x20] sm:$0xff]  }
 0x26f   :  { %v474_v7 = vmul.f32 %v1376_v12, %v1566_v24  ;;  %v1354_v24 = vld [vmem:[%s1729_s5] sm:$0xff]   ;;  %1269 = vmatprep.subr.bf16.mxu0 %v1651_v28 }
 0x270   :  { %v478_v13 = vpack.c.bf16 %v473_v11, %v472_v10  ;;  %1252 = vmatpush3.bf16.msra.mxu1 %v1353_v23  ;;  %1270 = vmatpush3.bf16.msra.mxu0 %v1651_v28 }
 0x271   :  { %v1378_v14 = vpop.eup %1377  ;;  %1253 = vmatprep.subr.bf16.mxu1 %v1354_v24 }
 0x272   :  { %1235 = vmatprep.mubr.bf16.mxu0 %v478_v13  ;;  %v475_v15 = vmul.f32 %v1378_v14, %v1575_v29  ;;  %v1658_v29 = vld [vmem:[%s1730_s6 + $0x18] sm:$0xff]  }
 0x273   :  { %1271 = vmatprep.subr.bf16.mxu0 %v1658_v29 }
 0x274   :  { %v479_v16 = vpack.c.bf16 %v475_v15, %v474_v7  ;;  %1254 = vmatpush3.bf16.msra.mxu1 %v1354_v24  ;;  %1272 = vmatpush3.bf16.msra.mxu0 %v1658_v29 }
 0x275   :  { %1287 = vmatprep.subr.bf16.mxu1 %v1630_v25 }
 0x276   :  { %1236 = vmatmul.mubr.bf16.gmra.mxu0 %v479_v16 }
 0x323   :  { %v1663_v30 = vpop.f32.mrf.mxu0 }
 0x324   :  { %v611_v31 = vmul.f32 %v1663_v30, %v1663_v30 }
 0x325   :  { %v1667_v32 = vpop.f32.mrf.mxu0 }
 0x326   :  { %v619_v33 = vmul.f32 %v1663_v30, %v611_v31  ;;  %v609_v34 = vmul.f32 %v1667_v32, %v1667_v32 }
 0x327   :  { %v1234_v35 = vpop.f32.mrf.mxu0 }
 0x328   :  { %v627_v36 = vmul.f32 0.044715, %v619_v33  ;;  %v617_v37 = vmul.f32 %v609_v34, %v1667_v32  ;;  %v612_v38 = vmul.f32 %v1234_v35, %v1234_v35 }
 0x329   :  { %v581_v39 = vpop.f32.mrf.mxu0 }
 0x32a   :  { %v635_v40 = vadd.f32 %v1663_v30, %v627_v36  ;;  %v625_v41 = vmul.f32 0.044715, %v617_v37  ;;  %v620_v42 = vmul.f32 %v1234_v35, %v612_v38  ;;  %v610_v43 = vmul.f32 %v581_v39, %v581_v39 }
 0x32c   :  { %v643_v44 = vmul.f32 0.7978846, %v635_v40  ;;  %v633_v45 = vadd.f32 %v625_v41, %v1667_v32  ;;  %v628_v46 = vmul.f32 0.044715, %v620_v42  ;;  %v618_v47 = vmul.f32 %v610_v43, %v581_v39 }
 0x32e   :  { %1379 = vtanh.f32 %v643_v44  ;;  %v641_v48 = vmul.f32 0.7978846, %v633_v45  ;;  %v636_v49 = vadd.f32 %v1234_v35, %v628_v46  ;;  %v626_v50 = vmul.f32 0.044715, %v618_v47 }
 0x330   :  { %1381 = vtanh.f32 %v641_v48  ;;  %v644_v51 = vmul.f32 0.7978846, %v636_v49  ;;  %v634_v52 = vadd.f32 %v626_v50, %v581_v39 }
 0x332   :  { %1383 = vtanh.f32 %v644_v51  ;;  %v642_v53 = vmul.f32 0.7978846, %v634_v52 }
 0x334   :  { %1385 = vtanh.f32 %v642_v53 }
 0x336   :  { %v1675_v54 = vpop.f32.mrf.mxu0 }
 0x337   :  { %v615_v55 = vmul.f32 %v1675_v54, %v1675_v54 }
 0x338   :  { %v1679_v56 = vpop.f32.mrf.mxu0 }
 0x339   :  { %v623_v57 = vmul.f32 %v1675_v54, %v615_v55  ;;  %v613_v58 = vmul.f32 %v1679_v56, %v1679_v56 }
 0x33a   :  { %v1238_v59 = vpop.f32.mrf.mxu0 }
 0x33b   :  { %v1380_v60 = vpop.eup %1379  ;;  %v631_v61 = vmul.f32 0.044715, %v623_v57  ;;  %v621_v62 = vmul.f32 %v613_v58, %v1679_v56  ;;  %v616_v63 = vmul.f32 %v1238_v59, %v1238_v59 }
 0x33c   :  { %v597_v0 = vpop.f32.mrf.mxu0  ;;  %v659_v6 = vadd.f32 1.0, %v1380_v60 }
 0x33d   :  { %v1382_v1 = vpop.eup %1381  ;;  %v639_v2 = vadd.f32 %v1675_v54, %v631_v61  ;;  %v629_v3 = vmul.f32 0.044715, %v621_v62  ;;  %v624_v4 = vmul.f32 %v1238_v59, %v616_v63  ;;  %v614_v5 = vmul.f32 %v597_v0, %v597_v0 }
 0x33e   :  { %v657_v8 = vadd.f32 1.0, %v1382_v1  ;;  %v667_v21 = vmul.f32 0.5, %v659_v6 }
 0x33f   :  { %v1384_v9 = vpop.eup %1383  ;;  %v647_v10 = vmul.f32 0.7978846, %v639_v2  ;;  %v637_v11 = vadd.f32 %v629_v3, %v1679_v56  ;;  %v632_v12 = vmul.f32 0.044715, %v624_v4  ;;  %v622_v13 = vmul.f32 %v614_v5, %v597_v0 }
 0x340   :  { %v660_v14 = vadd.f32 1.0, %v1384_v9  ;;  %v665_v18 = vmul.f32 0.5, %v657_v8  ;;  %v675_v37 = vmul.f32 %v1663_v30, %v667_v21 }
 0x341   :  { %v1386_v7 = vpop.eup %1385  ;;  %v645_v15 = vmul.f32 0.7978846, %v637_v11  ;;  %v640_v16 = vadd.f32 %v1238_v59, %v632_v12  ;;  %v630_v17 = vmul.f32 0.044715, %v622_v13  ;;  %1387 = vtanh.f32 %v647_v10  ;;  %v1055_v11 = vld [vmem:[%s1731_s7] ss:$0 sm:$0xff] }
 0x342   :  { %v668_v19 = vmul.f32 0.5, %v660_v14  ;;  %v658_v20 = vadd.f32 1.0, %v1386_v7  ;;  %v673_v34 = vmul.f32 %v665_v18, %v1667_v32 }
 0x343   :  { %1389 = vtanh.f32 %v645_v15  ;;  %v648_v22 = vmul.f32 0.7978846, %v640_v16  ;;  %v638_v23 = vadd.f32 %v630_v17, %v597_v0 }
 0x344   :  { %v666_v24 = vmul.f32 0.5, %v658_v20  ;;  %v676_v31 = vmul.f32 %v1234_v35, %v668_v19 }
 0x345   :  { %1391 = vtanh.f32 %v648_v22  ;;  %v646_v33 = vmul.f32 0.7978846, %v638_v23 }
 0x346   :  { %v674_v36 = vmul.f32 %v666_v24, %v581_v39  ;;  %v682_v40 = vpack.c.bf16 %v676_v31, %v675_v37 }
 0x347   :  { %1393 = vtanh.f32 %v646_v33 }
 0x348   :  { %v681_v38 = vpack.c.bf16 %v674_v36, %v673_v34 }
 0x34a   :  { %1255 = vmatprep.mubr.bf16.mxu1 %v681_v38 }
 0x34b   :  { %1256 = vmatmul.mubr.bf16.vlgmr.msra.gmra.mxu1 %v682_v40 }
 0x34c   :  { %1295 = vmatpush3.bf16.msra.mxu1 %v1630_v25 }
 0x34d   :  { %1288 = vmatprep.subr.bf16.mxu1 %v1635_v26 }
 0x34e   :  { %v1388_v41 = vpop.eup %1387 }
 0x34f   :  { %v663_v39 = vadd.f32 1.0, %v1388_v41 }
 0x350   :  { %v1390_v42 = vpop.eup %1389  ;;  %1296 = vmatpush3.bf16.msra.mxu1 %v1635_v26 }
 0x351   :  { %v661_v35 = vadd.f32 1.0, %v1390_v42  ;;  %1289 = vmatprep.subr.bf16.mxu1 %v1644_v27  ;;  %v671_v25 = vmul.f32 0.5, %v663_v39 }
 0x352   :  { %v1392_v32 = vpop.eup %1391 }
 0x353   :  { %v664_v43 = vadd.f32 1.0, %v1392_v32  ;;  %v669_v44 = vmul.f32 0.5, %v661_v35  ;;  %v679_v50 = vmul.f32 %v1675_v54, %v671_v25 }
 0x354   :  { %v1394_v30 = vpop.eup %1393  ;;  %1297 = vmatpush3.bf16.msra.mxu1 %v1644_v27  ;;  %v1360_v27 = vld [vmem:[%s1730_s6 + $0x10] sm:$0xff]  }
 0x355   :  { %v672_v45 = vmul.f32 0.5, %v664_v43  ;;  %v662_v46 = vadd.f32 1.0, %v1394_v30  ;;  %1290 = vmatprep.subr.bf16.mxu1 %v1651_v28  ;;  %v677_v26 = vmul.f32 %v669_v44, %v1679_v56  ;;  %1273 = vmatprep.subr.bf16.mxu0 %v1360_v27 }
 0x356   :  { %1274 = vmatpush3.bf16.msra.mxu0 %v1360_v27 }
 0x357   :  { %v670_v47 = vmul.f32 0.5, %v662_v46  ;;  %v680_v48 = vmul.f32 %v1238_v59, %v672_v45 }
 0x358   :  { %1298 = vmatpush3.bf16.msra.mxu1 %v1651_v28  ;;  %v1361_v28 = vld [vmem:[%s1730_s6 + $0x8] sm:$0xff]  }
 0x359   :  { %v678_v49 = vmul.f32 %v670_v47, %v597_v0  ;;  %1291 = vmatprep.subr.bf16.mxu1 %v1658_v29  ;;  %v684_v52 = vpack.c.bf16 %v680_v48, %v679_v50  ;;  %1275 = vmatprep.subr.bf16.mxu0 %v1361_v28 }
 0x35a   :  { %1276 = vmatpush3.bf16.msra.mxu0 %v1361_v28 }
 0x35b   :  { %v683_v51 = vpack.c.bf16 %v678_v49, %v677_v26 }
 0x35c   :  { %1299 = vmatpush3.bf16.msra.mxu1 %v1658_v29  ;;  %v1362_v29 = vld [vmem:[%s1730_s6] sm:$0xff]  }
 0x35d   :  { %1259 = vmatprep.mubr.bf16.mxu1 %v683_v51  ;;  %1292 = vmatprep.subr.bf16.mxu1 %v1360_v27 }
 0x35e   :  { %1260 = vmatmul.mubr.bf16.gmra.mxu1 %v684_v52  ;;  %1277 = vmatprep.subr.bf16.mxu0 %v1362_v29 }
 0x35f   :  { %1278 = vmatpush3.bf16.msra.mxu0 %v1362_v29 }
 0x360   :  { %1300 = vmatpush3.bf16.msra.mxu1 %v1360_v27 }
 0x361   :  { %1293 = vmatprep.subr.bf16.mxu1 %v1361_v28 }
 0x364   :  { %1301 = vmatpush3.bf16.msra.mxu1 %v1361_v28 }
 0x365   :  { %1294 = vmatprep.subr.bf16.mxu1 %v1362_v29 }
 0x368   :  { %1302 = vmatpush3.bf16.msra.mxu1 %v1362_v29 }
 0x40b   :  { %v1257_v53 = vpop.f32.mrf.mxu1 }
 0x40c   :  { %v816_v60 = vmax.f32 %v1257_v53, 0.0 }
 0x40d   :  { %v783_v54 = vpop.f32.mrf.mxu1 }
 0x40e   :  { %v814_v58 = vmax.f32 %v783_v54, 0.0 }
 0x40f   :  { %v1258_v55 = vpop.f32.mrf.mxu1 }
 0x410   :  { %v817_v56 = vmax.f32 %v1258_v55, 0.0 }
 0x411   :  { %v786_v57 = vpop.f32.mrf.mxu1 }
 0x412   :  { %v815_v59 = vmax.f32 %v786_v57, 0.0  ;;  %v823_v62 = vpack.c.bf16 %v817_v56, %v816_v60 }
 0x414   :  { %v822_v61 = vpack.c.bf16 %v815_v59, %v814_v58 }
 0x416   :  { %1279 = vmatprep.mubr.bf16.mxu0 %v822_v61 }
 0x417   :  { %1280 = vmatmul.mubr.bf16.vlgmr.msra.gmra.mxu0 %v823_v62 }
 0x41e   :  { %v1261_v63 = vpop.f32.mrf.mxu1 }
 0x41f   :  { %v820_v6 = vmax.f32 %v1261_v63, 0.0 }
 0x420   :  { %v799_v0 = vpop.f32.mrf.mxu1 }
 0x421   :  { %v818_v4 = vmax.f32 %v799_v0, 0.0 }
 0x422   :  { %v1262_v1 = vpop.f32.mrf.mxu1 }
 0x423   :  { %v821_v2 = vmax.f32 %v1262_v1, 0.0 }
 0x424   :  { %v802_v3 = vpop.f32.mrf.mxu1 }
 0x425   :  { %v819_v5 = vmax.f32 %v802_v3, 0.0  ;;  %v825_v9 = vpack.c.bf16 %v821_v2, %v820_v6 }
 0x427   :  { %v824_v8 = vpack.c.bf16 %v819_v5, %v818_v4 }
 0x429   :  { %1283 = vmatprep.mubr.bf16.mxu1 %v824_v8 }
 0x42a   :  { %1284 = vmatmul.mubr.bf16.vlgmr.msra.gmra.mxu1 %v825_v9 }
 0x4d7   :  { %v1281_v10 = vpop.f32.mrf.mxu0 }
 0x4d8   :  { %v940_v14 = vadd.f32 %v1281_v10, %v1055_v11 }
 0x4d9   :  { %v931_v12 = vpop.f32.mrf.mxu0 }
 0x4da   :  { %v932_v16 = vadd.f32 %v1055_v11, %v931_v12 }
 0x4db   :  { %v1282_v13 = vpop.f32.mrf.mxu0 }
 0x4dc   :  { %v943_v7 = vadd.f32 %v1282_v13, %v1055_v11 }
 0x4dd   :  { %v934_v15 = vpop.f32.mrf.mxu0 }
 0x4de   :  { %v1088_v17 = vpack.c.bf16 %v943_v7, %v940_v14  ;;  %v935_v18 = vadd.f32 %v1055_v11, %v934_v15 }
 0x4e0   :  { %1100 = vst [vmem:[%s1732_s8 + $0x8] sm:$0xff] %v1088_v17   ;;  %v1083_v19 = vpack.c.bf16 %v935_v18, %v932_v16 }
 0x4e2   :  { %1084 = vst [vmem:[%s1732_s8] sm:$0xff] %v1083_v19  }
 0x4ea   :  { %v1285_v20 = vpop.f32.mrf.mxu1 }
 0x4eb   :  { %v956_v23 = vadd.f32 %v1285_v20, %v1055_v11 }
 0x4ec   :  { %v947_v21 = vpop.f32.mrf.mxu1 }
 0x4ed   :  { %v948_v33 = vadd.f32 %v1055_v11, %v947_v21 }
 0x4ee   :  { %v1286_v22 = vpop.f32.mrf.mxu1 }
 0x4ef   :  { %v959_v24 = vadd.f32 %v1286_v22, %v1055_v11 }
 0x4f0   :  { %v950_v31 = vpop.f32.mrf.mxu1 }
 0x4f1   :  { %v1098_v34 = vpack.c.bf16 %v959_v24, %v956_v23  ;;  %v951_v36 = vadd.f32 %v1055_v11, %v950_v31 }
 0x4f3   :  { %1102 = vst [vmem:[%s1732_s8 + $0x18] sm:$0xff] %v1098_v34   ;;  %v1093_v37 = vpack.c.bf16 %v951_v36, %v948_v33 }
 0x4f5   :  { %1101 = vst [vmem:[%s1732_s8 + $0x10] sm:$0xff] %v1093_v37  }

</bundles_post_ra>
